<compile_context>
chip_gen: v6e
topology: v6e:2x2x1
jax: 0.10.0
libtpu: 0.0.40
codegen_flags: <defaults>
</compile_context>

<pallas_src>
import functools

import jax
import jax.numpy as jnp
import numpy as np
from jax.experimental import pallas as pl
from jax.experimental.pallas import tpu as pltpu


# ---------------------------------------------------------------------------
# Kernels
# ---------------------------------------------------------------------------
def kv_project_kernel(k_ref, v_ref, wk_ref, bk_ref, wv_ref, bv_ref,
                      kh_ref, vh_ref):
    """Fused all-head K/V projections, computed exactly once (not per q-tile)."""
    B, TS, D = k_ref.shape
    HD = wk_ref.shape[1]          # h * dk
    HV = wv_ref.shape[1]          # h * dv

    k2 = k_ref[...].reshape(B * TS, D)       # bf16 (pre-cast in wrapper)
    v2 = v_ref[...].reshape(B * TS, D)       # bf16
    kh = jnp.dot(k2, wk_ref[...], preferred_element_type=jnp.float32) + bk_ref[...]
    vh = jnp.dot(v2, wv_ref[...], preferred_element_type=jnp.float32) + bv_ref[...]
    kh_ref[...] = kh.reshape(B, TS, HD).astype(kh_ref.dtype)
    vh_ref[...] = vh.reshape(B, TS, HV).astype(vh_ref.dtype)


def mha_kernel(q_ref, kh_ref, vh_ref, wq_ref, bq_ref, wo_ref, bo_ref, o_ref, *, h):
    """Per-query-tile: Q projection, per-head attention, batch-axis softmax,
    fused concat + output Linear."""
    B, TQ, D = q_ref.shape
    _, S, HD = kh_ref.shape
    HV = vh_ref.shape[2]
    dk = HD // h
    dv = HV // h

    # --- Q projection for this tile (1/sqrt(dk) already folded into wq/bq) --
    q2 = q_ref[...].reshape(B * TQ, D)                                  # bf16
    qh = jnp.dot(q2, wq_ref[...], preferred_element_type=jnp.float32) + bq_ref[...]
    qh = qh.reshape(B, TQ, HD).astype(jnp.bfloat16)
    kh = kh_ref[...]                                                    # (B,S,HD) bf16
    vh = vh_ref[...]                                                    # (B,S,HV) bf16

    # --- per-head scaled dot product (bf16 MXU operands, f32 accumulation) --
    heads = []
    for i in range(h):                         # static unroll (h is a Python int)
        qi = qh[:, :, i * dk:(i + 1) * dk]     # (B, TQ, dk)
        ki = kh[:, :, i * dk:(i + 1) * dk]     # (B, S,  dk)
        vi = vh[:, :, i * dv:(i + 1) * dv]     # (B, S,  dv)
        s = jnp.einsum('bqd,bsd->bqs', qi, ki,
                       preferred_element_type=jnp.float32)
        heads.append(jnp.einsum('bqs,bsd->bqd', s.astype(jnp.bfloat16), vi,
                                preferred_element_type=jnp.float32))
    raw = jnp.concatenate(heads, axis=-1)      # (B, TQ, h*dv), lane-dense, f32

    # --- legacy nn.Softmax(dim=None) on 3-D -> softmax over dim 0 (batch) ---
    # softmax(concat) == concat(softmax) because it acts per (query, feature).
    m = jnp.max(raw, axis=0, keepdims=True)
    e = jnp.exp(raw - m)
    p = e * pl.reciprocal(jnp.sum(e, axis=0, keepdims=True), approx=False)

    # --- fused concat + output Linear: one (B*TQ, h*dv) @ (h*dv, D) matmul ---
    out = jnp.dot(p.reshape(B * TQ, HV).astype(jnp.bfloat16), wo_ref[...],
                  preferred_element_type=jnp.float32) + bo_ref[...]
    o_ref[...] = out.reshape(B, TQ, D).astype(o_ref.dtype)


# ---------------------------------------------------------------------------
# Wrappers
# ---------------------------------------------------------------------------
def _vmem_limit(block_bytes):
    # Explicit scoped-VMEM limit: 4x the double-buffered block footprint,
    # floored at 32 MiB, capped at 64 MiB (v7x physical VMEM per TensorCore).
    return int(min(max(4 * block_bytes, 32 * 1024 * 1024), 64 * 1024 * 1024))


def kv_project(k16, v16, wk_all, bk_all, wv_all, bv_all, *, block_s=None):
    """Fused all-head K/V projections -> bf16 (B, S, h*dk) / (B, S, h*dv)."""
    B, S, D = k16.shape
    HD = wk_all.shape[1]
    HV = wv_all.shape[1]
    ts = S if block_s is None else min(block_s, S)
    grid = (pl.cdiv(S, ts),)

    footprint = (2 * (2 * B * ts * D * 2)                    # k/v blocks (bf16, dbl-buf)
                 + 2 * (B * ts * (HD + HV) * 2)              # kh/vh out blocks (bf16)
                 + (D * HD + D * HV) * 2 + (HD + HV) * 4)    # weights (bf16) + biases

    row_spec = lambda w: pl.BlockSpec((B, ts, w), lambda i: (0, i, 0))
    w_spec = lambda shape: pl.BlockSpec(shape, lambda i: (0, 0))

    return pl.pallas_call(
        kv_project_kernel,
        out_shape=(jax.ShapeDtypeStruct((B, S, HD), jnp.bfloat16),
                   jax.ShapeDtypeStruct((B, S, HV), jnp.bfloat16)),
        grid_spec=pl.GridSpec(
            grid=grid,
            in_specs=[row_spec(D), row_spec(D),
                      w_spec((D, HD)), w_spec((1, HD)),
                      w_spec((D, HV)), w_spec((1, HV))],
            out_specs=(row_spec(HD), row_spec(HV))),
        compiler_params=pltpu.CompilerParams(
            dimension_semantics=("parallel",),
            vmem_limit_bytes=_vmem_limit(footprint)),
    )(k16, v16, wk_all, bk_all, wv_all, bv_all)


def multihead_attention(q, k, v, params, *, h, block_q=None):
    """params = pack_params(...): (Wq_all(D,h*dk) bf16 scaled, bq(1,h*dk) f32 scaled,
    Wk_all bf16, bk f32, Wv_all bf16, bv f32, Wo^T(h*dv,D) bf16, bo(1,D) f32)."""
    wq_all, bq_all, wk_all, bk_all, wv_all, bv_all, wo_t, bo = params
    B, Sq, D = q.shape
    Sk = k.shape[1]
    HD = wq_all.shape[1]
    HV = wv_all.shape[1]

    # bf16 MXU operands created once in the wrapper -> halves HBM->VMEM DMA.
    q16 = q.astype(jnp.bfloat16)
    k16 = k.astype(jnp.bfloat16)
    v16 = v.astype(jnp.bfloat16)

    # K/V projections computed exactly once (not recomputed per query tile).
    kh, vh = kv_project(k16, v16, wk_all, bk_all, wv_all, bv_all)

    tq = Sq if block_q is None else min(block_q, Sq)
    if tq != Sq:
        # (8,128) BlockSpec divisibility + clean edge handling.
        assert tq % 8 == 0 and Sq % tq == 0, \
            "block_q must be a multiple of 8 and divide the query length"
    grid = (pl.cdiv(Sq, tq),)

    footprint = (2 * (B * tq * D * 2)                 # q blocks (bf16, dbl-buf)
                 + 2 * (B * Sk * (HD + HV) * 2)       # kh/vh blocks (bf16)
                 + (D * HD + HV * D) * 2 + (HD + D) * 4
                 + 2 * (B * tq * D * 4))              # out blocks (f32)

    q_spec = pl.BlockSpec((B, tq, D), lambda i: (0, i, 0))
    kvh_spec = lambda w: pl.BlockSpec((B, Sk, w), lambda i: (0, 0, 0))
    w_spec = lambda shape: pl.BlockSpec(shape, lambda i: (0, 0))

    return pl.pallas_call(
        functools.partial(mha_kernel, h=h),
        out_shape=jax.ShapeDtypeStruct((B, Sq, D), q.dtype),
        grid_spec=pl.GridSpec(
            grid=grid,
            in_specs=[q_spec, kvh_spec(HD), kvh_spec(HV),
                      w_spec((D, HD)), w_spec((1, HD)),   # Wq_all, bq (scaled)
                      w_spec((HV, D)), w_spec((1, D))],   # Wo^T,   bo
            out_specs=pl.BlockSpec((B, tq, D), lambda i: (0, i, 0))),
        compiler_params=pltpu.CompilerParams(
            dimension_semantics=("parallel",),            # query tiles independent
            vmem_limit_bytes=_vmem_limit(footprint)),
    )(q16, kh, vh, wq_all, bq_all, wo_t, bo)


# ---------------------------------------------------------------------------
# Parameter construction / packing and a pure-JAX reference (f32).
# ---------------------------------------------------------------------------
def init_per_head_params(key, model_dim, h, scale=0.05):
    dk = model_dim // h
    dv = model_dim // h
    ks = jax.random.split(key, 8)
    wq = scale * jax.random.normal(ks[0], (h, dk, model_dim), jnp.float32)
    bq = scale * jax.random.normal(ks[1], (h, dk), jnp.float32)
    wk = scale * jax.random.normal(ks[2], (h, dk, model_dim), jnp.float32)
    bk = scale * jax.random.normal(ks[3], (h, dk), jnp.float32)
    wv = scale * jax.random.normal(ks[4], (h, dv, model_dim), jnp.float32)
    bv = scale * jax.random.normal(ks[5], (h, dv), jnp.float32)
    wo = scale * jax.random.normal(ks[6], (model_dim, h * dv), jnp.float32)
    bo = scale * jax.random.normal(ks[7], (model_dim,), jnp.float32)
    return (wq, bq, wk, bk, wv, bv, wo, bo)


def pack_params(per_head):
    """Stack per-head Linear weights for fused matmuls; fold 1/sqrt(dk) into
    Wq/bq and pre-cast all weight matrices to bf16 (biases stay f32)."""
    wq, bq, wk, bk, wv, bv, wo, bo = per_head
    h, dk, D = wq.shape
    dv = wv.shape[1]
    scale = 1.0 / float(np.sqrt(dk))
    # x @ Wq_all == concat_i(x @ wq_i^T)
    wq_all = (wq.reshape(h * dk, D).T * scale).astype(jnp.bfloat16)   # (D, h*dk)
    bq_all = bq.reshape(1, h * dk) * scale                            # f32
    wk_all = wk.reshape(h * dk, D).T.astype(jnp.bfloat16)             # (D, h*dk)
    bk_all = bk.reshape(1, h * dk)
    wv_all = wv.reshape(h * dv, D).T.astype(jnp.bfloat16)             # (D, h*dv)
    bv_all = bv.reshape(1, h * dv)
    wo_t = wo.T.astype(jnp.bfloat16)                                  # (h*dv, D)
    bo_2d = bo.reshape(1, D)
    return (wq_all, bq_all, wk_all, bk_all, wv_all, bv_all, wo_t, bo_2d)


def reference(q, k, v, per_head):
    """Pure-JAX f32 replica of the PyTorch forward (for correctness check)."""
    wq, bq, wk, bk, wv, bv, wo, bo = per_head
    h, dk, D = wq.shape
    heads = []
    for i in range(h):
        qh = q @ wq[i].T + bq[i]
        kh = k @ wk[i].T + bk[i]
        vh = v @ wv[i].T + bv[i]
        scores = jnp.einsum('bqd,bsd->bqs', qh, kh) / (dk ** 0.5)
        head = jnp.einsum('bqs,bsd->bqd', scores, vh)
        heads.append(jax.nn.softmax(head, axis=0))   # legacy Softmax(dim=None) on 3-D
    cat = jnp.concatenate(heads, axis=2)             # (B, S, h*dv)
    return cat @ wo.T + bo


if __name__ == "__main__":
    model_dim, h = 128, 4          # model_dim = 128 as in the PyTorch spec
    B, S = 2, 8

    key = jax.random.PRNGKey(0)
    kq, kk, kv_, kp = jax.random.split(key, 4)
    q = jax.random.normal(kq, (B, S, model_dim), jnp.float32)
    k = jax.random.normal(kk, (B, S, model_dim), jnp.float32)
    v = jax.random.normal(kv_, (B, S, model_dim), jnp.float32)

    per_head = init_per_head_params(kp, model_dim, h)
    params = pack_params(per_head)

    out = multihead_attention(q, k, v, params, h=h)
    out = jax.block_until_ready(out)

    ref = reference(q, k, v, per_head)
    np.testing.assert_allclose(np.asarray(out), np.asarray(ref),
                               rtol=5e-2, atol=5e-2)
    print("KERNEL_OK")
</pallas_src>

<mosaic_0001>
module attributes {stable_mosaic.version = 11 : i64} {
  func.func @kv_project_kernel(%arg0: i32, %arg1: memref<2x8x128xbf16, #tpu.memory_space<vmem>>, %arg2: memref<2x8x128xbf16, #tpu.memory_space<vmem>>, %arg3: memref<128x128xbf16, #tpu.memory_space<vmem>>, %arg4: memref<1x128xf32, #tpu.memory_space<vmem>>, %arg5: memref<128x128xbf16, #tpu.memory_space<vmem>>, %arg6: memref<1x128xf32, #tpu.memory_space<vmem>>, %arg7: memref<2x8x128xbf16, #tpu.memory_space<vmem>>, %arg8: memref<2x8x128xbf16, #tpu.memory_space<vmem>>) attributes {dimension_semantics = [#tpu.dimension_semantics<parallel>], iteration_bounds = array<i64: 1>, scalar_prefetch = 0 : i64, scratch_operands = 0 : i64, tpu.core_type = #tpu.core_type<tc>, window_params = [{transform_indices = @transform_0, window_bounds = array<i64: 2, 8, 128>}, {transform_indices = @transform_1, window_bounds = array<i64: 2, 8, 128>}, {pipeline_mode = #tpu.pipeline_mode<synchronous>, transform_indices = @transform_2, window_bounds = array<i64: 128, 128>}, {pipeline_mode = #tpu.pipeline_mode<synchronous>, transform_indices = @transform_3, window_bounds = array<i64: 1, 128>}, {pipeline_mode = #tpu.pipeline_mode<synchronous>, transform_indices = @transform_4, window_bounds = array<i64: 128, 128>}, {pipeline_mode = #tpu.pipeline_mode<synchronous>, transform_indices = @transform_5, window_bounds = array<i64: 1, 128>}, {transform_indices = @transform_6, window_bounds = array<i64: 2, 8, 128>}, {transform_indices = @transform_7, window_bounds = array<i64: 2, 8, 128>}]} {
    %c0 = arith.constant 0 : index
    %c0_0 = arith.constant 0 : index
    %c0_1 = arith.constant 0 : index
    %0 = vector.load %arg1[%c0, %c0_0, %c0_1] : memref<2x8x128xbf16, #tpu.memory_space<vmem>>, vector<2x8x128xbf16>
    %1 = vector.shape_cast %0 : vector<2x8x128xbf16> to vector<16x128xbf16>
    %c0_2 = arith.constant 0 : index
    %c0_3 = arith.constant 0 : index
    %c0_4 = arith.constant 0 : index
    %2 = vector.load %arg2[%c0_2, %c0_3, %c0_4] : memref<2x8x128xbf16, #tpu.memory_space<vmem>>, vector<2x8x128xbf16>
    %3 = vector.shape_cast %2 : vector<2x8x128xbf16> to vector<16x128xbf16>
    %c0_5 = arith.constant 0 : index
    %c0_6 = arith.constant 0 : index
    %4 = vector.load %arg3[%c0_5, %c0_6] : memref<128x128xbf16, #tpu.memory_space<vmem>>, vector<128x128xbf16>
    %cst = arith.constant dense<0.000000e+00> : vector<16x128xf32>
    %5 = tpu.matmul %1, %4, %cst {dimension_numbers = #tpu.dot_dimension_numbers<[1], [0], [0], [1], [0, 0, 1, 1], [], []>} : vector<16x128xbf16>, vector<128x128xbf16>, vector<16x128xf32> -> vector<16x128xf32>
    %c0_7 = arith.constant 0 : index
    %c0_8 = arith.constant 0 : index
    %6 = vector.load %arg4[%c0_7, %c0_8] : memref<1x128xf32, #tpu.memory_space<vmem>>, vector<1x128xf32>
    %7 = vector.broadcast %6 : vector<1x128xf32> to vector<16x128xf32>
    %8 = arith.addf %5, %7 : vector<16x128xf32>
    %c0_9 = arith.constant 0 : index
    %c0_10 = arith.constant 0 : index
    %9 = vector.load %arg5[%c0_9, %c0_10] : memref<128x128xbf16, #tpu.memory_space<vmem>>, vector<128x128xbf16>
    %cst_11 = arith.constant dense<0.000000e+00> : vector<16x128xf32>
    %10 = tpu.matmul %3, %9, %cst_11 {dimension_numbers = #tpu.dot_dimension_numbers<[1], [0], [0], [1], [0, 0, 1, 1], [], []>} : vector<16x128xbf16>, vector<128x128xbf16>, vector<16x128xf32> -> vector<16x128xf32>
    %c0_12 = arith.constant 0 : index
    %c0_13 = arith.constant 0 : index
    %11 = vector.load %arg6[%c0_12, %c0_13] : memref<1x128xf32, #tpu.memory_space<vmem>>, vector<1x128xf32>
    %12 = vector.broadcast %11 : vector<1x128xf32> to vector<16x128xf32>
    %13 = arith.addf %10, %12 : vector<16x128xf32>
    %14 = vector.shape_cast %8 : vector<16x128xf32> to vector<2x8x128xf32>
    %15 = arith.truncf %14 : vector<2x8x128xf32> to vector<2x8x128xbf16>
    %c0_14 = arith.constant 0 : index
    %c0_15 = arith.constant 0 : index
    %c0_16 = arith.constant 0 : index
    %16 = vector.load %arg7[%c0_14, %c0_15, %c0_16] : memref<2x8x128xbf16, #tpu.memory_space<vmem>>, vector<2x8x128xbf16>
    tpu.vector_store %arg7[%c0_14, %c0_15, %c0_16], %15 {strides = array<i32>} : memref<2x8x128xbf16, #tpu.memory_space<vmem>>, vector<2x8x128xbf16>,
    %17 = vector.shape_cast %13 : vector<16x128xf32> to vector<2x8x128xf32>
    %18 = arith.truncf %17 : vector<2x8x128xf32> to vector<2x8x128xbf16>
    %c0_17 = arith.constant 0 : index
    %c0_18 = arith.constant 0 : index
    %c0_19 = arith.constant 0 : index
    %19 = vector.load %arg8[%c0_17, %c0_18, %c0_19] : memref<2x8x128xbf16, #tpu.memory_space<vmem>>, vector<2x8x128xbf16>
    tpu.vector_store %arg8[%c0_17, %c0_18, %c0_19], %18 {strides = array<i32>} : memref<2x8x128xbf16, #tpu.memory_space<vmem>>, vector<2x8x128xbf16>,
    return
  }
  func.func @transform_0(%arg0: i32) -> (i32, i32, i32) {
    %c0_i32 = arith.constant 0 : i32
    %c0_i32_0 = arith.constant 0 : i32
    %c0_i32_1 = arith.constant 0 : i32
    return %c0_i32, %arg0, %c0_i32_0 : i32, i32, i32
  }
  func.func @transform_1(%arg0: i32) -> (i32, i32, i32) {
    %c0_i32 = arith.constant 0 : i32
    %c0_i32_0 = arith.constant 0 : i32
    %c0_i32_1 = arith.constant 0 : i32
    return %c0_i32, %arg0, %c0_i32_0 : i32, i32, i32
  }
  func.func @transform_2(%arg0: i32) -> (i32, i32) {
    %c0_i32 = arith.constant 0 : i32
    %c0_i32_0 = arith.constant 0 : i32
    %c0_i32_1 = arith.constant 0 : i32
    return %c0_i32, %c0_i32_0 : i32, i32
  }
  func.func @transform_3(%arg0: i32) -> (i32, i32) {
    %c0_i32 = arith.constant 0 : i32
    %c0_i32_0 = arith.constant 0 : i32
    %c0_i32_1 = arith.constant 0 : i32
    return %c0_i32, %c0_i32_0 : i32, i32
  }
  func.func @transform_4(%arg0: i32) -> (i32, i32) {
    %c0_i32 = arith.constant 0 : i32
    %c0_i32_0 = arith.constant 0 : i32
    %c0_i32_1 = arith.constant 0 : i32
    return %c0_i32, %c0_i32_0 : i32, i32
  }
  func.func @transform_5(%arg0: i32) -> (i32, i32) {
    %c0_i32 = arith.constant 0 : i32
    %c0_i32_0 = arith.constant 0 : i32
    %c0_i32_1 = arith.constant 0 : i32
    return %c0_i32, %c0_i32_0 : i32, i32
  }
  func.func @transform_6(%arg0: i32) -> (i32, i32, i32) {
    %c0_i32 = arith.constant 0 : i32
    %c0_i32_0 = arith.constant 0 : i32
    %c0_i32_1 = arith.constant 0 : i32
    return %c0_i32, %arg0, %c0_i32_0 : i32, i32, i32
  }
  func.func @transform_7(%arg0: i32) -> (i32, i32, i32) {
    %c0_i32 = arith.constant 0 : i32
    %c0_i32_0 = arith.constant 0 : i32
    %c0_i32_1 = arith.constant 0 : i32
    return %c0_i32, %arg0, %c0_i32_0 : i32, i32, i32
  }
}

</mosaic_0001>

<bundles_post_ra>
// kernel: tpu_custom_call.1
= control target key start
LH: loop header
LB: loop body
LE: loop exit
PB: predicated region body
PF: predicated region fallthrough
CT: control target
= control target key end

     0   :  { %13 = vsyncpa [#allocation3], 0  ;;  %s704_s0 = inlined_call_operand.hbm [shape: bf16[2,8,128], index: 0, kind: input, shape index: {}]   ;;  %s705_s1 = inlined_call_operand.hbm [shape: bf16[2,8,128], index: 1, kind: input, shape index: {}]   ;;  %s706_s2 = inlined_call_operand.hbm [shape: bf16[128,128], index: 2, kind: input, shape index: {}]   ;;  %s707_s3 = inlined_call_operand.vmem [shape: f32[1,128], index: 3, kind: input, shape index: {}]   ;;  %s708_s4 = inlined_call_operand.hbm [shape: bf16[128,128], index: 4, kind: input, shape index: {}]   ;;  %s709_s5 = inlined_call_operand.vmem [shape: f32[1,128], index: 5, kind: input, shape index: {}]   ;;  %s710_s6 = inlined_call_operand.hbm [shape: bf16[2,8,128], index: 6, kind: output, shape index: {0}]   ;;  %s711_s7 = inlined_call_operand.hbm [shape: bf16[2,8,128], index: 7, kind: output, shape index: {1}]  }
   0x1   :  { %14 = vsyncpa [#allocation6], 0 }
   0x2   :  { %15 = vsyncpa [#allocation9], 0 }
   0x3   :  { %16 = vsyncpa [#allocation4], 0 }
   0x4   :  { %17 = vsyncpa [#allocation12], 0  ;;  %s612_s24 = smov [#allocation5]   ;;  %s613_s26 = smov [#allocation2]  }
   0x5   :  { %s35_s25 = sshll.u32 %s612_s24, 4  ;;  %s23_s27 = sshll.u32 %s613_s26, 4  ;;  %s36_s25 = int_to_ptr.vmem [resolvable:$true] %s35_s25  ;;  %s24_s27 = int_to_ptr.vmem [resolvable:$true] %s23_s27 }
   0x6   :  { %s490_s28 = scalar_lea.vmem %s36_s25, 128  ;;  %p495_p1 = scmp.lt.s32.totalorder %s36_s25, %s36_s25 }
   0x7   :  { %p491_p0 = scmp.ne.s32.totalorder %s36_s25, %s490_s28  ;;  %p496_p2 = scmp.lt.s32.totalorder %s490_s28, %s490_s28 }
   0x9   :  { %p497_p3 = por %p496_p2, %p495_p1 }
   0xb   :  { %p498_p4 = pnand %p497_p3, %p491_p0 }
   0xd   :  { %501 = shalt.err (!%p498_p4)
}
   0xe   :  { %s614_s29 = smov 64   ;;  %s615_s30 = smov 4  }
   0xf   :  { %41 = dma.hbm_to_vmem [thread:$0]  %s705_s1, 128, %s36_s25, [#allocation6], %s614_s29, %s614_s29, %s615_s30  }
  0x10   :  { %s510_s10 = scalar_lea.vmem %s24_s27, 128  ;;  %p515_p6 = scmp.lt.s32.totalorder %s24_s27, %s24_s27 }
  0x11   :  { %p511_p5 = scmp.ne.s32.totalorder %s24_s27, %s510_s10  ;;  %p516_p7 = scmp.lt.s32.totalorder %s510_s10, %s510_s10 }
  0x13   :  { %p517_p8 = por %p516_p7, %p515_p6 }
  0x15   :  { %p518_p9 = pnand %p517_p8, %p511_p5 }
  0x17   :  { %521 = shalt.err (!%p518_p9)
}
  0x18   :  { %29 = dma.hbm_to_vmem [thread:$0]  %s704_s0, 128, %s24_s27, [#allocation3], %s614_s29, %s614_s29, %s615_s30  }
  0x19   :  { %s616_s13 = smov [#allocation7]   ;;  %s617_s15 = smov [#allocation8]  }
  0x1a   :  { %s47_s14 = sshll.u32 %s616_s13, 4  ;;  %s61_s16 = sshll.u32 %s617_s15, 4  ;;  %s48_s14 = int_to_ptr.vmem [resolvable:$true] %s47_s14  ;;  %s62_s16 = int_to_ptr.vmem [resolvable:$true] %s61_s16 }
  0x1b   :  { %s530_s1 = scalar_lea.vmem %s48_s14, 1024  ;;  %p535_p11 = scmp.lt.s32.totalorder %s48_s14, %s48_s14 }
  0x1c   :  { %p531_p10 = scmp.ne.s32.totalorder %s48_s14, %s530_s1  ;;  %p536_p12 = scmp.lt.s32.totalorder %s530_s1, %s530_s1 }
  0x1e   :  { %p537_p13 = por %p536_p12, %p535_p11 }
  0x20   :  { %p538_p0 = pnand %p537_p13, %p531_p10 }
  0x22   :  { %541 = shalt.err (!%p538_p0)
}
  0x23   :  { %53 = dma.hbm_to_vmem [thread:$0]  %s706_s2, 1024, %s48_s14, [#allocation6], %s614_s29, %s614_s29, %s615_s30  }
  0x24   :  { %s550_s0 = scalar_lea.vmem %s62_s16, 1024  ;;  %p555_p2 = scmp.lt.s32.totalorder %s62_s16, %s62_s16 }
  0x25   :  { %p551_p1 = scmp.ne.s32.totalorder %s62_s16, %s550_s0  ;;  %p556_p3 = scmp.lt.s32.totalorder %s550_s0, %s550_s0 }
  0x27   :  { %p557_p4 = por %p556_p3, %p555_p2 }
  0x29   :  { %p558_p5 = pnand %p557_p4, %p551_p1 }
  0x2b   :  { %561 = shalt.err (!%p558_p5)
}
  0x2c   :  { %67 = dma.hbm_to_vmem [thread:$0]  %s708_s4, 1024, %s62_s16, [#allocation9], %s614_s29, %s614_s29, %s615_s30  }
  0x2d   :  { %602 = dma.done.wait [#allocation3], 128  }
  0x2e   :  { %603 = vsyncadd [#allocation3], 4294967168 }
  0x2f   :  { %604 = dma.done.wait [#allocation6], 1152  }
  0x30   :  { %605 = vsyncadd [#allocation6], 4294966144 }
  0x31   :  { %606 = dma.done.wait [#allocation9], 1024  }
  0x32   :  { %607 = vsyncadd [#allocation9], 4294966272  ;;  %v618_v0 = vmov 0.0   ;;  %vm619_vm0 = vmmov 0   ;;  %v464_v1 = vld [vmem:[#allocation7 + $0x38] sm:$0xff]   ;;  %v466_v3 = vld [vmem:[#allocation7 + $0x30] sm:$0xff]  }
  0x33   :  { %414 = vmatprep.subr.bf16.mxu0 %v618_v0  ;;  %434 = vmatprep.subr.bf16.mxu1 %v618_v0  ;;  %v465_v2 = vld [vmem:[#allocation8 + $0x38] sm:$0xff]   ;;  %v467_v4 = vld [vmem:[#allocation8 + $0x30] sm:$0xff]   ;;  %v468_v5 = vld [vmem:[#allocation7 + $0x28] sm:$0xff]   ;;  %s620_s23 = smov [#allocation10]   ;;  %s621_s25 = smov [#allocation11]  }
  0x34   :  { %430 = vmatprep.mubr.msk.bf16.mxu0 %vm619_vm0, %v618_v0  ;;  %450 = vmatprep.mubr.msk.bf16.mxu1 %vm619_vm0, %v618_v0  ;;  %v469_v6 = vld [vmem:[#allocation8 + $0x28] sm:$0xff]   ;;  %v470_v7 = vld [vmem:[#allocation7 + $0x20] sm:$0xff]   ;;  %v472_v9 = vld [vmem:[#allocation7 + $0x18] sm:$0xff]   ;;  %s336_s24 = sshll.u32 %s620_s23, 4  ;;  %s348_s26 = sshll.u32 %s621_s25, 4  ;;  %s337_s24 = int_to_ptr.vmem [resolvable:$true] %s336_s24  ;;  %s349_s26 = int_to_ptr.vmem [resolvable:$true] %s348_s26 }
  0x35   :  { %415 = vmatpush3.bf16.msra.mxu0 %v464_v1  ;;  %435 = vmatpush3.bf16.msra.mxu1 %v465_v2  ;;  %v471_v8 = vld [vmem:[#allocation8 + $0x20] sm:$0xff]   ;;  %v473_v10 = vld [vmem:[#allocation8 + $0x18] sm:$0xff]   ;;  %v474_v11 = vld [vmem:[#allocation7 + $0x10] sm:$0xff]   ;;  %p567_p7 = scmp.lt.s32.totalorder %s337_s24, %s337_s24 }
  0x36   :  { %416 = vmatprep.subr.bf16.mxu0 %v618_v0  ;;  %436 = vmatprep.subr.bf16.mxu1 %v618_v0  ;;  %v475_v12 = vld [vmem:[#allocation8 + $0x10] sm:$0xff]   ;;  %v476_v13 = vld [vmem:[#allocation7 + $0x8] sm:$0xff]   ;;  %v478_v15 = vld [vmem:[#allocation7] sm:$0xff]  }
  0x37   :  { %v477_v14 = vld [vmem:[#allocation8 + $0x8] sm:$0xff]   ;;  %v479_v16 = vld [vmem:[#allocation8] sm:$0xff]   ;;  %v480_v17 = vld [vmem:[#allocation2] sm:$0xff]  }
  0x38   :  { %v481_v18 = vld [vmem:[#allocation5] sm:$0xff]   ;;  %v366_v21 = vld [vmem:[%s707_s3] ss:$0 sm:$0xff]  ;;  %s562_s3 = scalar_lea.vmem %s337_s24, 128 }
  0x39   :  { %417 = vmatpush3.bf16.msra.mxu0 %v466_v3  ;;  %437 = vmatpush3.bf16.msra.mxu1 %v467_v4  ;;  %v376_v23 = vld [vmem:[%s709_s5] ss:$0 sm:$0xff]  ;;  %p563_p6 = scmp.ne.s32.totalorder %s337_s24, %s562_s3  ;;  %p568_p8 = scmp.lt.s32.totalorder %s562_s3, %s562_s3 }
  0x3a   :  { %418 = vmatprep.subr.bf16.mxu0 %v618_v0  ;;  %438 = vmatprep.subr.bf16.mxu1 %v618_v0 }
  0x3b   :  { %p569_p9 = por %p568_p8, %p567_p7 }
  0x3d   :  { %419 = vmatpush3.bf16.msra.mxu0 %v468_v5  ;;  %439 = vmatpush3.bf16.msra.mxu1 %v469_v6  ;;  %p570_p10 = pnand %p569_p9, %p563_p6 }
  0x3e   :  { %420 = vmatprep.subr.bf16.mxu0 %v618_v0  ;;  %440 = vmatprep.subr.bf16.mxu1 %v618_v0 }
  0x41   :  { %421 = vmatpush3.bf16.msra.mxu0 %v470_v7  ;;  %441 = vmatpush3.bf16.msra.mxu1 %v471_v8 }
  0x42   :  { %422 = vmatprep.subr.bf16.mxu0 %v618_v0  ;;  %442 = vmatprep.subr.bf16.mxu1 %v618_v0 }
  0x45   :  { %423 = vmatpush3.bf16.msra.mxu0 %v472_v9  ;;  %443 = vmatpush3.bf16.msra.mxu1 %v473_v10 }
  0x46   :  { %424 = vmatprep.subr.bf16.mxu0 %v618_v0  ;;  %444 = vmatprep.subr.bf16.mxu1 %v618_v0 }
  0x49   :  { %425 = vmatpush3.bf16.msra.mxu0 %v474_v11  ;;  %445 = vmatpush3.bf16.msra.mxu1 %v475_v12 }
  0x4a   :  { %426 = vmatprep.subr.bf16.mxu0 %v618_v0  ;;  %446 = vmatprep.subr.bf16.mxu1 %v618_v0 }
  0x4d   :  { %427 = vmatpush3.bf16.msra.mxu0 %v476_v13  ;;  %447 = vmatpush3.bf16.msra.mxu1 %v477_v14 }
  0x4e   :  { %428 = vmatprep.subr.bf16.mxu0 %v618_v0  ;;  %448 = vmatprep.subr.bf16.mxu1 %v618_v0 }
  0x51   :  { %429 = vmatpush3.bf16.msra.mxu0 %v478_v15  ;;  %449 = vmatpush3.bf16.msra.mxu1 %v479_v16 }
  0x54   :  { %431 = vmatmul.mubr.bf16.vlgmr.msra.gmra.mxu0 %v480_v17  ;;  %451 = vmatmul.mubr.bf16.vlgmr.msra.gmra.mxu1 %v481_v18 }
 0x114   :  { %v198_v19 = vpop.f32.mrf.mxu0  ;;  %v316_v20 = vpop.f32.mrf.mxu1 }
 0x115   :  { %v199_v26 = vadd.f32 %v366_v21, %v198_v19  ;;  %v317_v29 = vadd.f32 %v376_v23, %v316_v20 }
 0x116   :  { %v432_v22 = vpop.f32.mrf.mxu0  ;;  %v452_v24 = vpop.f32.mrf.mxu1 }
 0x118   :  { %v201_v25 = vpop.f32.mrf.mxu0  ;;  %v319_v28 = vpop.f32.mrf.mxu1 }
 0x119   :  { %v202_v27 = vadd.f32 %v366_v21, %v201_v25  ;;  %v320_v30 = vadd.f32 %v376_v23, %v319_v28 }
 0x11a   :  { %v433_v31 = vpop.f32.mrf.mxu0  ;;  %v453_v33 = vpop.f32.mrf.mxu1 }
 0x11b   :  { %v389_v32 = vpack.c.bf16 %v202_v27, %v199_v26  ;;  %v394_v34 = vpack.c.bf16 %v320_v30, %v317_v29 }
 0x11d   :  { %390 = vst [vmem:[#allocation10] sm:$0xff] %v389_v32   ;;  %395 = vst [vmem:[#allocation11] sm:$0xff] %v394_v34  }
 0x11e   :  { %573 = shalt.err (!%p570_p10)
}
 0x11f   :  { %342 = dma.vmem_to_hbm [thread:$0]  %s337_s24, 128, %s710_s6, [#allocation4], %s614_s29, %s614_s29, %s615_s30  }
 0x120   :  { %s582_s28 = scalar_lea.vmem %s349_s26, 128  ;;  %p587_p12 = scmp.lt.s32.totalorder %s349_s26, %s349_s26 }
 0x121   :  { %p583_p11 = scmp.ne.s32.totalorder %s349_s26, %s582_s28  ;;  %p588_p13 = scmp.lt.s32.totalorder %s582_s28, %s582_s28 }
 0x123   :  { %p589_p0 = por %p588_p13, %p587_p12 }
 0x125   :  { %p590_p1 = pnand %p589_p0, %p583_p11 }
 0x127   :  { %593 = shalt.err (!%p590_p1)
}
 0x128   :  { %354 = dma.vmem_to_hbm [thread:$0]  %s349_s26, 128, %s711_s7, [#allocation12], %s614_s29, %s614_s29, %s615_s30  }
 0x129   :  { %608 = dma.done.wait [#allocation4], 128  }
 0x12a   :  { %609 = vsyncadd [#allocation4], 4294967168 }
 0x12b   :  { %610 = dma.done.wait [#allocation12], 128  }
 0x12c   :  { %611 = vsyncadd [#allocation12], 4294967168 }
 0x12d   :  { %361 = vsyncpa [#allocation3], 1 }
 0x12e   :  { %362 = vsyncpa [#allocation6], 1 }
 0x12f   :  { %363 = vsyncpa [#allocation9], 1 }
 0x130   :  { %364 = vsyncpa [#allocation4], 1 }
 0x131   :  { %365 = vsyncpa [#allocation12], 1 }

</bundles_post_ra>
